<compile_context>
chip_gen: v6e
topology: v6e:2x2x1
jax: 0.10.0
libtpu: 0.0.40
codegen_flags: <defaults>
</compile_context>

<pallas_src>
import functools

import jax
import jax.numpy as jnp
from jax import lax
from jax.experimental import pallas as pl
from jax.experimental.pallas import tpu as pltpu

EPS = 1e-5  # torch.nn.BatchNorm1d default eps


# --------------------------------------------------------------------------- #
# Kernel
# --------------------------------------------------------------------------- #
def film_kernel(x_ref, g_ref, b_ref, o_ref, *, c_block, n_valid, n_pad):
    # x_ref: (B, Cb, Tp)  input channel block (time padded to lane multiple)
    # g_ref: (B, C, 1)    FiLM scale, resident across the whole grid (f32)
    # b_ref: (B, C, 1)    FiLM shift, resident across the whole grid (f32)
    # o_ref: (B, Cb, Tp)  output channel block
    c = pl.program_id(0)
    x = x_ref[...].astype(jnp.float32)

    inv_n = 1.0 / n_valid
    # Padded time samples are exactly 0.0, so they contribute nothing to the sum.
    mean = jnp.sum(x, axis=(0, 2), keepdims=True) * inv_n          # (1, Cb, 1)
    d = x - mean
    ssq = jnp.sum(d * d, axis=(0, 2), keepdims=True)
    if n_pad:  # padded samples contribute exactly mean^2 each to ssq -> remove
        ssq = ssq - n_pad * (mean * mean)
    var = jnp.maximum(ssq * inv_n, 0.0)                            # biased var

    # Slice this channel block out of the resident g/b (no per-step tiny DMAs).
    start = pl.multiple_of(c * c_block, c_block)
    g = g_ref[:, pl.ds(start, c_block), :]                         # (B, Cb, 1)
    b = b_ref[:, pl.ds(start, c_block), :]

    # Fold BN normalize + FiLM into one affine: out = x * scale + shift.
    scale = g * lax.rsqrt(var + EPS)                               # (B, Cb, 1)
    shift = b - mean * scale
    o_ref[...] = (x * scale + shift).astype(o_ref.dtype)


# --------------------------------------------------------------------------- #
# Resource planning
# --------------------------------------------------------------------------- #
def _round_up(n, m):
    return (n + m - 1) // m * m


def _vmem_plan():
    """Generation-aware (tile_budget_bytes, vmem_limit_bytes)."""
    try:
        cap = int(pltpu.get_tpu_info().vmem_capacity_bytes)
        if cap <= 0:
            raise ValueError
    except Exception:
        cap = 64 << 20  # conservative fallback (v7x-sized)
    # v5e/v6e (128 MiB): budget 48 MiB, limit 96 MiB.  v7x (64 MiB): 24 / 48 MiB.
    tile_budget = min(cap * 3 // 8, 48 << 20)
    vmem_limit = min(cap * 3 // 4, 96 << 20)
    return tile_budget, vmem_limit


def _footprint_bytes(B, cb, Tp, itemsize):
    """Double-buffered in + out tiles, plus ~2 f32 tiles of in-kernel temps."""
    tile = B * cb * Tp
    return 4 * tile * itemsize + 2 * tile * 4


def _pick_channel_block(B, C, Tp, itemsize, tile_budget, sublane, min_steps=4):
    """Largest channel block dividing C (multiple of `sublane` or == C) that
    fits the VMEM budget, preferring >= min_steps grid steps for pipelining
    and megacore sharding."""
    if C % sublane != 0:
        cb = C  # single full-extent block (block dim == full array dim is legal)
        if _footprint_bytes(B, cb, Tp, itemsize) > tile_budget:
            # TODO(synk): add a two-phase T-tiled scheme (reduce then apply)
            # for very long sequences instead of failing.
            raise ValueError(
                "FiLM kernel: tile does not fit VMEM budget; T tiling needed "
                f"(B={B}, C={C}, Tp={Tp}).")
        return cb
    cands = [cb for cb in range(sublane, C + 1, sublane) if C % cb == 0]
    fitting = [cb for cb in cands
               if _footprint_bytes(B, cb, Tp, itemsize) <= tile_budget]
    if not fitting:
        # TODO(synk): two-phase T-tiled scheme for very long T.
        raise ValueError(
            "FiLM kernel: even the smallest channel block exceeds the VMEM "
            f"budget (B={B}, C={C}, Tp={Tp}); tile the time axis instead.")
    piped = [cb for cb in fitting if C // cb >= min_steps]
    if piped:
        return max(piped)       # biggest tile that still pipelines / megacores
    return min(fitting)         # otherwise maximize the number of grid steps


# --------------------------------------------------------------------------- #
# Wrapper
# --------------------------------------------------------------------------- #
def film_forward(x, cond, w, bias, *, channel_block=None):
    """x: (B, C, T); cond: (B, 1, D); w: (2C, D) torch-Linear layout; bias: (2C,)."""
    B, C, T = x.shape

    # Tiny adaptor Linear(D, 2C): hoisted out of the kernel (a 4-deep
    # contraction would waste a full MXU push per tile).  g/b kept in f32.
    adapted = jnp.einsum("bd,kd->bk", cond[:, 0, :].astype(jnp.float32),
                         w.astype(jnp.float32),
                         precision=lax.Precision.HIGHEST) + bias       # (B, 2C)
    g = adapted[:, :C].reshape(B, C, 1).astype(jnp.float32)
    b = adapted[:, C:].reshape(B, C, 1).astype(jnp.float32)

    # Lane-dense time axis: pad T up to a multiple of 128 with zeros.
    Tp = _round_up(T, 128)
    xp = x if Tp == T else jnp.pad(x, ((0, 0), (0, 0), (0, Tp - T)))

    itemsize = jnp.dtype(x.dtype).itemsize
    sublane = 16 if itemsize == 2 else 8

    tile_budget, vmem_limit = _vmem_plan()
    # Charge the resident g/b copies (lane-padded to 128, sublane-padded to 8).
    gb_bytes = 2 * B * _round_up(C, 8) * 128 * 4
    if channel_block is not None:
        cb = channel_block
        assert C % cb == 0 and (cb == C or cb % sublane == 0), (C, cb, sublane)
    else:
        cb = _pick_channel_block(B, C, Tp, itemsize,
                                 tile_budget - gb_bytes, sublane)
    grid = (C // cb,)

    kernel = functools.partial(
        film_kernel, c_block=cb,
        n_valid=float(B * T), n_pad=float(B * (Tp - T)))

    out = pl.pallas_call(
        kernel,
        out_shape=jax.ShapeDtypeStruct((B, C, Tp), x.dtype),
        grid=grid,
        in_specs=[
            pl.BlockSpec((B, cb, Tp), lambda c: (0, c, 0)),   # x: channel-tiled
            pl.BlockSpec((B, C, 1), lambda c: (0, 0, 0)),     # g: resident
            pl.BlockSpec((B, C, 1), lambda c: (0, 0, 0)),     # b: resident
        ],
        out_specs=pl.BlockSpec((B, cb, Tp), lambda c: (0, c, 0)),
        compiler_params=pltpu.CompilerParams(
            dimension_semantics=("parallel",),
            vmem_limit_bytes=int(vmem_limit)),
    )(xp, g, b)

    return out if Tp == T else out[:, :, :T]


# --------------------------------------------------------------------------- #
# Pure-JAX reference (mirrors the PyTorch forward)
# --------------------------------------------------------------------------- #
def film_reference(x, cond, w, bias):
    adapted = jnp.einsum("bld,kd->blk", cond, w,
                         precision=lax.Precision.HIGHEST) + bias   # (B, 1, 2C)
    C = x.shape[1]
    g = jnp.transpose(adapted[..., :C], (0, 2, 1))                 # (B, C, 1)
    b = jnp.transpose(adapted[..., C:], (0, 2, 1))                 # (B, C, 1)
    mean = jnp.mean(x, axis=(0, 2), keepdims=True)
    var = jnp.mean((x - mean) ** 2, axis=(0, 2), keepdims=True)
    xn = (x - mean) / jnp.sqrt(var + EPS)
    return xn * g + b


if __name__ == "__main__":
    B, C, T, D = 2, 32, 256, 4   # batch, num_features, time, cond_dim

    key = jax.random.PRNGKey(0)
    kx, kc, kw, kb = jax.random.split(key, 4)

    x = jax.random.normal(kx, (B, C, T), dtype=jnp.float32)
    cond = jax.random.normal(kc, (B, 1, D), dtype=jnp.float32)
    w = jax.random.uniform(kw, (2 * C, D), dtype=jnp.float32,
                           minval=-0.5, maxval=0.5)
    bias = jax.random.uniform(kb, (2 * C,), dtype=jnp.float32,
                              minval=-0.5, maxval=0.5)

    ref = film_reference(x, cond, w, bias)

    # Auto-picked channel block (cb=8 here -> 4-step pipelined / megacore grid).
    out_auto = jax.block_until_ready(film_forward(x, cond, w, bias))
    assert out_auto.shape == (B, C, T)
    assert jnp.allclose(out_auto, ref, atol=2e-5, rtol=2e-5)

    # Explicit channel block override.
    out_cb8 = jax.block_until_ready(film_forward(x, cond, w, bias, channel_block=8))
    assert jnp.allclose(out_cb8, ref, atol=2e-5, rtol=2e-5)

    # Unaligned T -> exercises lane padding + exact pad-corrected statistics.
    T2 = 200
    x2 = jax.random.normal(kx, (B, C, T2), dtype=jnp.float32)
    ref2 = film_reference(x2, cond, w, bias)
    out2 = jax.block_until_ready(film_forward(x2, cond, w, bias))
    assert out2.shape == (B, C, T2)
    assert jnp.allclose(out2, ref2, atol=2e-5, rtol=2e-5)

    # Optional bf16 I/O path (stats + affine still in f32 inside the kernel).
    x_bf = x.astype(jnp.bfloat16)
    ref_bf = film_reference(x_bf.astype(jnp.float32), cond, w, bias)
    out_bf = jax.block_until_ready(film_forward(x_bf, cond, w, bias))
    assert out_bf.dtype == jnp.bfloat16
    assert jnp.allclose(out_bf.astype(jnp.float32), ref_bf, atol=3e-2, rtol=3e-2)

    print("KERNEL_OK")
</pallas_src>

<mosaic_0001>
module attributes {stable_mosaic.version = 11 : i64} {
  func.func @film_kernel(%arg0: i32, %arg1: memref<2x8x256xf32, #tpu.memory_space<vmem>>, %arg2: memref<2x32x1xf32, #tpu.memory_space<vmem>>, %arg3: memref<2x32x1xf32, #tpu.memory_space<vmem>>, %arg4: memref<2x8x256xf32, #tpu.memory_space<vmem>>) attributes {dimension_semantics = [#tpu.dimension_semantics<parallel>], iteration_bounds = array<i64: 4>, scalar_prefetch = 0 : i64, scratch_operands = 0 : i64, tpu.core_type = #tpu.core_type<tc>, window_params = [{transform_indices = @transform_0, window_bounds = array<i64: 2, 8, 256>}, {pipeline_mode = #tpu.pipeline_mode<synchronous>, transform_indices = @transform_1, window_bounds = array<i64: 2, 32, 1>}, {pipeline_mode = #tpu.pipeline_mode<synchronous>, transform_indices = @transform_2, window_bounds = array<i64: 2, 32, 1>}, {transform_indices = @transform_3, window_bounds = array<i64: 2, 8, 256>}]} {
    %c0 = arith.constant 0 : index
    %c0_0 = arith.constant 0 : index
    %c0_1 = arith.constant 0 : index
    %0 = vector.load %arg1[%c0, %c0_0, %c0_1] : memref<2x8x256xf32, #tpu.memory_space<vmem>>, vector<2x8x256xf32>
    %cst = arith.constant dense<0.000000e+00> : vector<8xf32>
    %1 = vector.multi_reduction <add>, %0, %cst [0, 2] : vector<2x8x256xf32> to vector<8xf32>
    %2 = vector.shape_cast %1 : vector<8xf32> to vector<1x8x1xf32>
    %cst_2 = arith.constant 0.001953125 : f32
    %3 = vector.broadcast %cst_2 : f32 to vector<1x8x1xf32>
    %4 = arith.mulf %2, %3 : vector<1x8x1xf32>
    %5 = vector.broadcast %4 : vector<1x8x1xf32> to vector<2x8x256xf32>
    %6 = arith.subf %0, %5 : vector<2x8x256xf32>
    %7 = arith.mulf %6, %6 : vector<2x8x256xf32>
    %cst_3 = arith.constant dense<0.000000e+00> : vector<8xf32>
    %8 = vector.multi_reduction <add>, %7, %cst_3 [0, 2] : vector<2x8x256xf32> to vector<8xf32>
    %9 = vector.shape_cast %8 : vector<8xf32> to vector<1x8x1xf32>
    %cst_4 = arith.constant 0.001953125 : f32
    %10 = vector.broadcast %cst_4 : f32 to vector<1x8x1xf32>
    %11 = arith.mulf %9, %10 : vector<1x8x1xf32>
    %cst_5 = arith.constant 0.000000e+00 : f32
    %12 = vector.broadcast %cst_5 : f32 to vector<1x8x1xf32>
    %13 = arith.maximumf %11, %12 : vector<1x8x1xf32>
    %c8_i32 = arith.constant 8 : i32
    %14 = arith.muli %arg0, %c8_i32 : i32
    %15 = tpu.assume_multiple %14, 8 : i32
    %c0_6 = arith.constant 0 : index
    %16 = arith.index_cast %15 : i32 to index
    %c0_7 = arith.constant 0 : index
    %17 = vector.load %arg2[%c0_6, %16, %c0_7] : memref<2x32x1xf32, #tpu.memory_space<vmem>>, vector<2x8x1xf32>
    %c0_8 = arith.constant 0 : index
    %18 = arith.index_cast %15 : i32 to index
    %c0_9 = arith.constant 0 : index
    %19 = vector.load %arg3[%c0_8, %18, %c0_9] : memref<2x32x1xf32, #tpu.memory_space<vmem>>, vector<2x8x1xf32>
    %cst_10 = arith.constant 9.99999974E-6 : f32
    %20 = vector.broadcast %cst_10 : f32 to vector<1x8x1xf32>
    %21 = arith.addf %13, %20 : vector<1x8x1xf32>
    %22 = math.rsqrt %21 : vector<1x8x1xf32>
    %23 = vector.broadcast %22 : vector<1x8x1xf32> to vector<2x8x1xf32>
    %24 = arith.mulf %17, %23 : vector<2x8x1xf32>
    %25 = vector.broadcast %4 : vector<1x8x1xf32> to vector<2x8x1xf32>
    %26 = arith.mulf %25, %24 : vector<2x8x1xf32>
    %27 = arith.subf %19, %26 : vector<2x8x1xf32>
    %28 = vector.broadcast %24 : vector<2x8x1xf32> to vector<2x8x256xf32>
    %29 = arith.mulf %0, %28 : vector<2x8x256xf32>
    %30 = vector.broadcast %27 : vector<2x8x1xf32> to vector<2x8x256xf32>
    %31 = arith.addf %29, %30 : vector<2x8x256xf32>
    %c0_11 = arith.constant 0 : index
    %c0_12 = arith.constant 0 : index
    %c0_13 = arith.constant 0 : index
    %32 = vector.load %arg4[%c0_11, %c0_12, %c0_13] : memref<2x8x256xf32, #tpu.memory_space<vmem>>, vector<2x8x256xf32>
    tpu.vector_store %arg4[%c0_11, %c0_12, %c0_13], %31 {strides = array<i32>} : memref<2x8x256xf32, #tpu.memory_space<vmem>>, vector<2x8x256xf32>,
    return
  }
  func.func @transform_0(%arg0: i32) -> (i32, i32, i32) {
    %c0_i32 = arith.constant 0 : i32
    %c0_i32_0 = arith.constant 0 : i32
    %c0_i32_1 = arith.constant 0 : i32
    return %c0_i32, %arg0, %c0_i32_0 : i32, i32, i32
  }
  func.func @transform_1(%arg0: i32) -> (i32, i32, i32) {
    %c0_i32 = arith.constant 0 : i32
    %c0_i32_0 = arith.constant 0 : i32
    %c0_i32_1 = arith.constant 0 : i32
    %c0_i32_2 = arith.constant 0 : i32
    return %c0_i32, %c0_i32_0, %c0_i32_1 : i32, i32, i32
  }
  func.func @transform_2(%arg0: i32) -> (i32, i32, i32) {
    %c0_i32 = arith.constant 0 : i32
    %c0_i32_0 = arith.constant 0 : i32
    %c0_i32_1 = arith.constant 0 : i32
    %c0_i32_2 = arith.constant 0 : i32
    return %c0_i32, %c0_i32_0, %c0_i32_1 : i32, i32, i32
  }
  func.func @transform_3(%arg0: i32) -> (i32, i32, i32) {
    %c0_i32 = arith.constant 0 : i32
    %c0_i32_0 = arith.constant 0 : i32
    %c0_i32_1 = arith.constant 0 : i32
    return %c0_i32, %arg0, %c0_i32_0 : i32, i32, i32
  }
}

</mosaic_0001>

<bundles_post_ra>
// kernel: tpu_custom_call.1
= control target key start
LH: loop header
LB: loop body
LE: loop exit
PB: predicated region body
PF: predicated region fallthrough
CT: control target
= control target key end

     0   :  { %8 = vsyncpa [#allocation4], 0  ;;  %s623_s0 = inlined_call_operand.vmem [shape: f32[2,32,256], index: 0, kind: input, shape index: {}]   ;;  %s624_s1 = inlined_call_operand.vmem [shape: f32[2,32,1], index: 1, kind: input, shape index: {}]   ;;  %s625_s2 = inlined_call_operand.vmem [shape: f32[2,32,1], index: 2, kind: input, shape index: {}]   ;;  %s626_s3 = inlined_call_operand.hbm [shape: f32[2,32,256], index: 3, kind: output, shape index: {}]  }
   0x1   :  { %10 = vsyncpa [#allocation4 + $0x1], 0  ;;  %s504_s12 = smov 0   ;;  %s506_s13 = smov 0  }
   0x2   :  { %s508_s14 = smov 0   ;;  %s510_s15 = smov 0  }
   0x3 LB: > { %s525_s16 = sadd.s32 4294967295, %s477_s15   ;;  %s353_s17 = sadd.s32 4294967294, %s477_s15   ;;  %s477_s15 = sphi %s510_s15, %s632_s15   ;;  %s473_s14 = sphi %s508_s14, %s631_s14   ;;  %s469_s13 = sphi %s506_s13, %s630_s13   ;;  %s465_s12 = sphi %s504_s12, %s629_s12  }
   0x4   : > { %s529_s18 = sadd.s32 1, %s477_s15   ;;  %s23_s19 = sadd.s32 1, %s473_s14 }
   0x5   : > { %s20_s20 = ssub.s32 %s477_s15, %s529_s18  ;;  %p30_p0 = scmp.ne.s32.totalorder %s473_s14, %s469_s13 }
   0x6   : > { %p21_p1 = scmp.eq.s32.totalorder %s20_s20, 0  ;;  %p31_p2 = scmp.eq.s32.totalorder %s477_s15, 0 }
   0x7   : > { %p102_p3 = scmp.eq.s32.totalorder %s525_s16, 3  ;;  %p107_p4 = scmp.ne.s32.totalorder %s469_s13, %s465_s12 }
   0x8   : > { %s541_s21 = scalar_select %p21_p1, %s473_s14, %s23_s19  }
   0x9   : > { %p32_p5 = por %p31_p2, %p30_p0  ;;  %p543_p6 = por %p102_p3, %p30_p0 }
   0xa   : > { %p108_p7 = scmp.eq.s32.totalorder %s353_s17, 3  ;;  %p355_p9 = scmp.ge.s32.totalorder %s477_s15, 4 }
   0xc   : > { %p547_p8 = por %p108_p7, %p107_p4  ;;  %130 = sbr.rel (%p355_p9) target bundleno = 23 (0x17), region = 24 }
  0x11   : > { %133 = sbr.rel (!%p32_p5) target bundleno = 23 (0x17), region = 28  ;;  %s135_s24 = sand.u32 (%p32_p5), 1, %s473_s14  }
  0x12   : > { %s368_s25 = sshll.u32 (%p32_p5), %s477_s15, 4  ;;  %s356_s26 = sshll.u32 (%p32_p5), %s135_s24, 5 }
  0x13   : > { %s140_s29 = scalar_lea.vmem (%p32_p5), %s623_s0, %s368_s25  ;;  %s137_s30 = scalar_lea.vmem (%p32_p5), [#allocation2], %s356_s26 }
  0x14   : > { %v153_v0 = vld [vmem:[%s140_s29] sm:$0xff] (%p32_p5)  ;;  %v155_v1 = vld [vmem:[%s140_s29 + $0x8] sm:$0xff] (%p32_p5) }
  0x15   : > { %v157_v2 = vld [vmem:[%s140_s29 + $0x40] sm:$0xff] (%p32_p5)  ;;  %154 = vst [vmem:[%s137_s30] sm:$0xff] (%p32_p5), %v153_v0  ;;  %156 = vst [vmem:[%s137_s30 + $0x8] sm:$0xff] (%p32_p5), %v155_v1  ;;  %v159_v3 = vld [vmem:[%s140_s29 + $0x48] sm:$0xff] (%p32_p5) }
  0x16   : > { %158 = vst [vmem:[%s137_s30 + $0x10] sm:$0xff] %v157_v2  ;;  %160 = vst [vmem:[%s137_s30 + $0x18] sm:$0xff] %v159_v3 }
  0x17 PF: > { %p359_p10 = scmp.ge.s32.totalorder %s477_s15, 1  ;;  %p165_p11 = scmp.lt.s32.totalorder %s477_s15, 5 }
  0x19   : > { %p166_p12 = pnand %p359_p10, %p165_p11 }
  0x1a   : > { %s172_s4 = sand.u32 (!%p166_p12), 1, %s469_s13   ;;  %s362_s7 = sshll.u32 (!%p166_p12), %s525_s16, 3 }
  0x1b   : > { %169 = sbr.rel (%p166_p12) target bundleno = 498 (0x1f2), region = 51  ;;  %s562_s5 = sshll.u32 (!%p166_p12), %s172_s4, 5 }
  0x1c   : > { %s174_s6 = scalar_lea.vmem (!%p166_p12), [#allocation2], %s562_s5  ;;  %s221_s10 = scalar_lea.vmem (!%p166_p12), %s624_s1, %s362_s7 }
  0x1d   : > { %s224_s19 = scalar_lea.vmem (!%p166_p12), %s625_s2, %s362_s7  ;;  %s194_s20 = scalar_lea.vmem (!%p166_p12), [#allocation3], %s562_s5 }
  0x1e   : > { %s281_s24 = sshll.u32 (!%p166_p12), %s194_s20, 4  ;;  %s369_s25 = sshll.u32 (!%p166_p12), %s525_s16, 8  ;;  %s574_s24 = int_to_ptr.vmem [resolvable:$true] %s281_s24 }
  0x1f   : > { %s579_s28 = scalar_lea.hbm (!%p166_p12), %s626_s3, %s369_s25  ;;  %s583_s16 = scalar_lea.sflag (!%p166_p12), [#allocation4], %s172_s4 }
  0x20   : > { %v195_v4 = vld [vmem:[%s174_s6] sm:$0xff]  ;;  %v196_v5 = vld [vmem:[%s174_s6 + $0x8] sm:$0xff]  ;;  %v197_v6 = vld [vmem:[%s174_s6 + $0x10] sm:$0xff]  ;;  %v479_v24 = vmov 0   ;;  %s417_s29 = scalar_lea.vmem %s574_s24, 512  ;;  %s480_s30 = smov [#allocation3]  }
  0x21   : > { %v199_v7 = vadd.f32 %v196_v5, %v195_v4  ;;  %v198_v8 = vld [vmem:[%s174_s6 + $0x18] sm:$0xff]  ;;  %413 = vset.pattern.permute.xlu1 %v479_v24  ;;  %414 = vset.pattern.permute.xlu0 %v479_v24  ;;  %v222_v29 = vld [vmem:[%s221_s10] sm:$0xff]  ;;  %p418_p13 = scmp.ne.s32.totalorder %s574_s24, %s417_s29  ;;  %s421_s5 = sshll.u32 %s480_s30, 4  ;;  %s422_s5 = int_to_ptr.vmem [resolvable:$false] %s421_s5 }
  0x22   : > { %v223_v30 = vld [vmem:[%s221_s10 + $0x20] sm:$0xff]  ;;  %s423_s6 = scalar_lea.vmem %s422_s5, 1024  ;;  %p424_p2 = scmp.lt.s32.totalorder %s574_s24, %s422_s5 }
  0x23   : > { %v200_v9 = vadd.f32 %v199_v7, %v197_v6  ;;  %v225_v34 = vld [vmem:[%s224_s19] sm:$0xff]  ;;  %p419_p0 = pnand %p418_p13, %p543_p6  ;;  %p425_p3 = scmp.lt.s32.totalorder %s423_s6, %s417_s29 }
  0x24   : > { %v226_v38 = vld [vmem:[%s224_s19 + $0x20] sm:$0xff] }
  0x25   : > { %v201_v10 = vadd.f32 %v200_v9, %v198_v8  ;;  %p420_p1 = pneg %p419_p0  ;;  %p426_p4 = por %p425_p3, %p424_p2 }
  0x27   : > { %202 = vadd.xlane.f32.xlu0 %v201_v10  ;;  %p427_p5 = pnand %p426_p4, %p420_p1 }
  0xb0   : > { %v203_v11 = vpop.xlane.xlu0 %202 }
  0xb1   : > { %v204_v12 = vmul.f32 0.001953125, %v203_v11 }
  0xb3   : > { %v205_v13 = vsub.f32 %v195_v4, %v204_v12  ;;  %v206_v14 = vsub.f32 %v196_v5, %v204_v12  ;;  %v207_v15 = vsub.f32 %v197_v6, %v204_v12  ;;  %v208_v16 = vsub.f32 %v198_v8, %v204_v12 }
  0xb5   : > { %v209_v17 = vmul.f32 %v205_v13, %v205_v13  ;;  %v210_v18 = vmul.f32 %v206_v14, %v206_v14  ;;  %v211_v19 = vmul.f32 %v207_v15, %v207_v15  ;;  %v212_v21 = vmul.f32 %v208_v16, %v208_v16 }
  0xb7   : > { %v213_v20 = vadd.f32 %v210_v18, %v209_v17 }
  0xb9   : > { %v214_v22 = vadd.f32 %v213_v20, %v211_v19 }
  0xbb   : > { %v215_v23 = vadd.f32 %v214_v22, %v212_v21 }
  0xbd   : > { %216 = vadd.xlane.f32.xlu0 %v215_v23 }
 0x146   : > { %v217_v25 = vpop.xlane.xlu0 %216 }
 0x147   : > { %v218_v26 = vmul.f32 0.001953125, %v217_v25 }
 0x149   : > { %v219_v27 = vmax.f32 %v218_v26, 0.0 }
 0x14b   : > { %v227_v28 = vadd.f32 1e-05, %v219_v27 }
 0x14d   : > { %415 = vrsqrt.f32 %v227_v28 }
 0x15a   : > { %v416_v31 = vpop.eup %415 }
 0x15b   : > { %v229_v32 = vmul.f32 %v416_v31, %v222_v29  ;;  %v230_v33 = vmul.f32 %v416_v31, %v223_v30 }
 0x15d   : > { %237 = vperm.xlu1 %413, %v229_v32   ;;  %v231_v35 = vmul.f32 %v229_v32, %v204_v12  ;;  %v232_v37 = vmul.f32 %v230_v33, %v204_v12 }
 0x15f   : > { %v233_v36 = vsub.f32 %v225_v34, %v231_v35  ;;  %v234_v39 = vsub.f32 %v226_v38, %v232_v37 }
 0x161   : > { %242 = vperm.xlu1 %413, %v230_v33   ;;  %251 = vperm.xlu0 %414, %v233_v36  }
 0x165   : > { %256 = vperm.xlu1 %413, %v234_v39  }
 0x1d8   : > { %v238_v40 = vpop.permute.xlu1 %237 }
 0x1d9   : > { %v245_v41 = vmul.f32 %v238_v40, %v195_v4  ;;  %v246_v42 = vmul.f32 %v238_v40, %v196_v5 }
 0x1dc   : > { %v243_v43 = vpop.permute.xlu1 %242  ;;  %v252_v44 = vpop.permute.xlu0 %251 }
 0x1dd   : > { %v259_v45 = vadd.f32 %v252_v44, %v245_v41  ;;  %v260_v46 = vadd.f32 %v252_v44, %v246_v42  ;;  %v247_v47 = vmul.f32 %v243_v43, %v197_v6  ;;  %v248_v48 = vmul.f32 %v243_v43, %v198_v8 }
 0x1df   : > { %263 = vst [vmem:[%s194_s20] sm:$0xff] %v259_v45  ;;  %264 = vst [vmem:[%s194_s20 + $0x8] sm:$0xff] %v260_v46 }
 0x1e0   : > { %v257_v49 = vpop.permute.xlu1 %256 }
 0x1e1   : > { %v261_v50 = vadd.f32 %v257_v49, %v247_v47  ;;  %v262_v51 = vadd.f32 %v257_v49, %v248_v48 }
 0x1e3   : > { %265 = vst [vmem:[%s194_s20 + $0x10] sm:$0xff] %v261_v50  ;;  %266 = vst [vmem:[%s194_s20 + $0x18] sm:$0xff] %v262_v51 }
 0x1e4   : > { %430 = shalt.err (!%p427_p5)
}
 0x1e5   : > { %s431_s4 = scalar_lea.hbm %s579_s28, 512  ;;  %s435_s9 = scalar_lea.hbm %s626_s3, 2048 }
 0x1e6   : > { %p432_p7 = scmp.ne.s32.totalorder %s579_s28, %s431_s4  ;;  %p436_p11 = scmp.lt.s32.totalorder %s579_s28, %s626_s3 }
 0x1e7   : > { %p437_p12 = scmp.lt.s32.totalorder %s435_s9, %s431_s4 }
 0x1e8   : > { %p433_p9 = pnand %p432_p7, %p543_p6 }
 0x1e9   : > { %p438_p13 = por %p437_p12, %p436_p11 }
 0x1ea   : > { %p434_p10 = pneg %p433_p9 }
 0x1ec   : > { %p439_p0 = pnand %p438_p13, %p434_p10 }
 0x1ee   : > { %442 = shalt.err (!%p439_p0)
}
 0x1ef   : > { %s481_s17 = smov 256   ;;  %s482_s19 = smov 1024  }
 0x1f0   : > { %s483_s20 = smov 16  }
 0x1f1   : > { %370 = dma.vmem_to_hbm [thread:$0]  (%p543_p6), %s574_s24, 512, %s579_s28, %s583_s16, %s481_s17, %s482_s19, %s483_s20  }
 0x1f2 PF: > { %p376_p1 = scmp.ge.s32.totalorder %s477_s15, 2  ;;  %s296_s25 = sand.u32 1, %s465_s12  }
 0x1f3   : > { %s297_s26 = scalar_lea.sflag [#allocation4], %s296_s25 }
 0x1f4   : > { %p373_p2 = pnand %p376_p1, %p547_p8 }
 0x1f6   : > { %p374_p3 = pneg %p373_p2 }
 0x1f8   : > { %460 = dma.done.wait (%p374_p3), %s297_s26, 512  }
 0x1f9   : > { %462 = vsyncadd (%p374_p3), %s297_s26, 4294966784  ;;  %p13_p4 = scmp.ge.s32.totalorder %s529_s18, 6   ;;  %s629_s12 = smov %s469_s13 }
 0x1fa   : > { %s630_s13 = smov %s473_s14  ;;  %s631_s14 = smov %s541_s21 }
 0x1fb   : > { %s632_s15 = smov %s529_s18  ;;  %15 = sbr.rel (!%p13_p4) target bundleno = 3 (0x3), region = 97 }
 0x200   :  { %302 = vsyncpa [#allocation4], 1 }
 0x201   :  { %304 = vsyncpa [#allocation4 + $0x1], 1 }

</bundles_post_ra>
